<compile_context>
chip_gen: v5e
topology: v5e:2x2
jax: 0.10.0
libtpu: 0.0.40
codegen_flags: <defaults>
</compile_context>

<pallas_src>
import functools

import jax
import jax.numpy as jnp
from jax.experimental import pallas as pl
from jax.experimental.pallas import tpu as pltpu

LANE = 128            # vreg lane width
SUBLANES = 8          # f32 sublanes per vreg
CHUNK_ROWS = 32       # rows per inner-loop chunk (int8 (32,128) tile aligned)
TR_MAX = 4096         # rows per grid step: 4096*128*4 B = 2 MiB per f32 input block
PAD_LOGIT = -60.0     # softplus(-60) ~ 9e-27: logit padding contributes nothing to the sums
VMEM_LIMIT = 32 * 1024 * 1024


def _cdiv(a, b):
    return -(-a // b)


def _round_up(a, b):
    return _cdiv(a, b) * b


def _bce_sums_kernel(x_ref, y_ref, o_ref, *, n_chunks):
    """One row-tile grid step of the per-plane BCE-with-logits partial sums.

    x_ref: (tr, 128) logits; y_ref: (tr, 128) labels (int8 / bf16 / f32).
    o_ref: (3, 8, 128) resident accumulator (same output block for every grid step):
      o_ref[0] += fold(y * softplus(-x))        # A
      o_ref[1] += fold((1-y) * softplus(x))     # B
      o_ref[2] += fold(y)                       # T
    The (tr,128) block is consumed in (32,128) chunks inside an unrolled fori_loop,
    accumulating into three (8,128) carries that stay in vregs (no big VMEM temporaries).
    """
    step = pl.program_id(0)

    @pl.when(step == 0)
    def _():
        o_ref[...] = jnp.zeros(o_ref.shape, o_ref.dtype)

    def fold(v):  # (32,128) -> (8,128): sum the 4 stacked vreg groups (pure VPU adds)
        return jnp.sum(v.reshape(CHUNK_ROWS // SUBLANES, SUBLANES, LANE), axis=0)

    def chunk_body(c, carry):
        sa, sb, st = carry
        r0 = pl.multiple_of(c * CHUNK_ROWS, CHUNK_ROWS)
        x = x_ref[pl.ds(r0, CHUNK_ROWS), :].astype(jnp.float32)
        y = y_ref[pl.ds(r0, CHUNK_ROWS), :].astype(jnp.float32)
        # numerically stable softplus
        sp_pos = jnp.maximum(x, 0.0) + jnp.log1p(jnp.exp(-jnp.abs(x)))   # softplus(x)
        sp_neg = sp_pos - x                                              # softplus(-x)
        sa = sa + fold(y * sp_neg)
        sb = sb + fold((1.0 - y) * sp_pos)
        st = st + fold(y)
        return sa, sb, st

    zero = jnp.zeros((SUBLANES, LANE), jnp.float32)
    sa, sb, st = jax.lax.fori_loop(0, n_chunks, chunk_body, (zero, zero, zero),
                                   unroll=min(8, n_chunks))

    o_ref[0] = o_ref[0] + sa
    o_ref[1] = o_ref[1] + sb
    o_ref[2] = o_ref[2] + st


def _plane_partial_sums(pred, truth):
    """Streams one plane through the kernel; returns (A, B, T) as f32 scalars."""
    n = int(pred.size)

    # logits: bf16 pass-through only if supplied as bf16, else f32 (reference dtype)
    x_dtype = jnp.bfloat16 if pred.dtype == jnp.bfloat16 else jnp.float32
    # labels: narrowest exact dtype (0/1 int or bool labels -> int8, 1 B/elem)
    if jnp.issubdtype(truth.dtype, jnp.integer) or truth.dtype == jnp.bool_:
        y_dtype = jnp.int8
    elif truth.dtype == jnp.bfloat16:
        y_dtype = jnp.bfloat16
    else:
        y_dtype = jnp.float32

    rows_needed = max(_cdiv(n, LANE), 1)
    tr = min(TR_MAX, _round_up(rows_needed, CHUNK_ROWS))   # rows per grid step
    rows = _round_up(rows_needed, tr)                      # per-plane padded row count
    n_blocks = rows // tr
    n_chunks = tr // CHUNK_ROWS

    x = pred.reshape(-1).astype(x_dtype)
    y = truth.reshape(-1).astype(y_dtype)
    pad = rows * LANE - n
    if pad:  # only when numel isn't already tile-shaped; padding is inert in the sums
        x = jnp.pad(x, (0, pad), constant_values=PAD_LOGIT)
        y = jnp.pad(y, (0, pad))
    x = x.reshape(rows, LANE)
    y = y.reshape(rows, LANE)

    x_bytes = jnp.dtype(x_dtype).itemsize
    y_bytes = jnp.dtype(y_dtype).itemsize
    cost = pl.CostEstimate(
        flops=12 * rows * LANE,
        transcendentals=2 * rows * LANE,
        bytes_accessed=rows * LANE * (x_bytes + y_bytes) + 3 * SUBLANES * LANE * 4,
    )

    out = pl.pallas_call(
        functools.partial(_bce_sums_kernel, n_chunks=n_chunks),
        out_shape=jax.ShapeDtypeStruct((3, SUBLANES, LANE), jnp.float32),
        grid_spec=pltpu.PrefetchScalarGridSpec(
            num_scalar_prefetch=0,
            grid=(n_blocks,),
            in_specs=[
                pl.BlockSpec((tr, LANE), lambda i: (i, 0)),
                pl.BlockSpec((tr, LANE), lambda i: (i, 0)),
            ],
            out_specs=pl.BlockSpec((3, SUBLANES, LANE), lambda i: (0, 0, 0)),
        ),
        compiler_params=pltpu.CompilerParams(
            dimension_semantics=("arbitrary",),
            vmem_limit_bytes=VMEM_LIMIT),
        cost_estimate=cost,
    )(x, y)

    s = jnp.sum(out, axis=(1, 2))   # (3,) = [A, B, T]
    return s[0], s[1], s[2]


def _plane_loss(pred, a, b, t):
    w = float(pred.shape[2]) / t             # pos_weight (inf/NaN if truth.sum()==0, as in torch)
    return (w * a + b) / float(pred.size)    # 'mean' reduction


def sparse_larmatch_loss(pred1, pred2, truth1, truth2):
    """SparseLArMatchLoss.forward (== forward_2plane)."""
    a1, b1, t1 = _plane_partial_sums(pred1, truth1)
    a2, b2, t2 = _plane_partial_sums(pred2, truth2)
    return 0.5 * (_plane_loss(pred1, a1, b1, t1) + _plane_loss(pred2, a2, b2, t2))


def _reference_loss(pred, truth):
    """Pure-JAX reference of BCEWithLogitsLoss(pos_weight, mean) for validation."""
    x = pred.astype(jnp.float32)
    y = truth.astype(jnp.float32)
    w = float(pred.shape[2]) / jnp.sum(y)
    sp_pos = jnp.maximum(x, 0.0) + jnp.log1p(jnp.exp(-jnp.abs(x)))
    sp_neg = sp_pos - x
    l = w * y * sp_neg + (1.0 - y) * sp_pos
    return jnp.mean(l)


if __name__ == "__main__":
    key = jax.random.PRNGKey(0)
    k1, k2, k3, k4 = jax.random.split(key, 4)

    # module convention: pred is (batch, 1, num_points) logits, truth is 0/1 labels
    N1, N2 = 4096, 1500            # N1 exercises the zero-copy (no-pad) path
    pred1 = jax.random.normal(k1, (1, 1, N1), dtype=jnp.float32)
    pred2 = jax.random.normal(k2, (1, 1, N2), dtype=jnp.float32)
    truth1 = (jax.random.uniform(k3, (1, 1, N1)) < 0.3).astype(jnp.int32)
    truth2 = (jax.random.uniform(k4, (1, 1, N2)) < 0.3).astype(jnp.int32)

    loss = sparse_larmatch_loss(pred1, pred2, truth1, truth2)
    loss = jax.block_until_ready(loss)

    ref = 0.5 * (_reference_loss(pred1, truth1) + _reference_loss(pred2, truth2))
    ref = jax.block_until_ready(ref)

    assert jnp.allclose(loss, ref, rtol=1e-5, atol=1e-6), (loss, ref)
    print("KERNEL_OK")
</pallas_src>

<mosaic_0001>
module attributes {stable_mosaic.version = 11 : i64} {
  func.func @_bce_sums_kernel(%arg0: i32, %arg1: memref<32x128xf32, #tpu.memory_space<vmem>>, %arg2: memref<32x128xi8, #tpu.memory_space<vmem>>, %arg3: memref<3x8x128xf32, #tpu.memory_space<vmem>>) attributes {dimension_semantics = [#tpu.dimension_semantics<arbitrary>], iteration_bounds = array<i64: 1>, scalar_prefetch = 0 : i64, scratch_operands = 0 : i64, tpu.core_type = #tpu.core_type<tc>, window_params = [{transform_indices = @transform_0, window_bounds = array<i64: 32, 128>}, {transform_indices = @transform_1, window_bounds = array<i64: 32, 128>}, {pipeline_mode = #tpu.pipeline_mode<synchronous>, transform_indices = @transform_2, window_bounds = array<i64: 3, 8, 128>}]} {
    %c0_i32 = arith.constant 0 : i32
    %0 = arith.cmpi eq, %arg0, %c0_i32 : i32
    %1 = arith.extui %0 : i1 to i32
    %c0_i32_0 = arith.constant 0 : i32
    %2 = arith.cmpi ne, %1, %c0_i32_0 : i32
    scf.if %2 {
      %cst_25 = arith.constant 0.000000e+00 : f32
      %51 = vector.broadcast %cst_25 : f32 to vector<3x8x128xf32>
      %c0_26 = arith.constant 0 : index
      %c0_27 = arith.constant 0 : index
      %c0_28 = arith.constant 0 : index
      %52 = vector.load %arg3[%c0_26, %c0_27, %c0_28] : memref<3x8x128xf32, #tpu.memory_space<vmem>>, vector<3x8x128xf32>
      tpu.vector_store %arg3[%c0_26, %c0_27, %c0_28], %51 {strides = array<i32>} : memref<3x8x128xf32, #tpu.memory_space<vmem>>, vector<3x8x128xf32>,
    } else {
    }
    %cst = arith.constant 0.000000e+00 : f32
    %3 = vector.broadcast %cst : f32 to vector<8x128xf32>
    %c0_i32_1 = arith.constant 0 : i32
    %c32_i32 = arith.constant 32 : i32
    %4 = arith.muli %c0_i32_1, %c32_i32 : i32
    %5 = tpu.assume_multiple %4, 32 : i32
    %6 = arith.index_cast %5 : i32 to index
    %c0 = arith.constant 0 : index
    %7 = vector.load %arg1[%6, %c0] : memref<32x128xf32, #tpu.memory_space<vmem>>, vector<32x128xf32>
    %8 = arith.index_cast %5 : i32 to index
    %c0_2 = arith.constant 0 : index
    %9 = vector.load %arg2[%8, %c0_2] : memref<32x128xi8, #tpu.memory_space<vmem>>, vector<32x128xi8>
    %10 = arith.sitofp %9 : vector<32x128xi8> to vector<32x128xf32>
    %cst_3 = arith.constant 0.000000e+00 : f32
    %11 = vector.broadcast %cst_3 : f32 to vector<32x128xf32>
    %12 = arith.maximumf %7, %11 : vector<32x128xf32>
    %13 = math.absf %7 : vector<32x128xf32>
    %cst_4 = arith.constant 0.000000e+00 : f32
    %14 = vector.broadcast %cst_4 : f32 to vector<32x128xf32>
    %15 = arith.subf %14, %13 : vector<32x128xf32>
    %16 = math.exp %15 : vector<32x128xf32>
    %17 = math.log1p %16 : vector<32x128xf32>
    %18 = arith.addf %12, %17 : vector<32x128xf32>
    %19 = arith.subf %18, %7 : vector<32x128xf32>
    %20 = arith.mulf %10, %19 : vector<32x128xf32>
    %21 = vector.shape_cast %20 : vector<32x128xf32> to vector<4x8x128xf32>
    %cst_5 = arith.constant dense<0.000000e+00> : vector<8x128xf32>
    %22 = vector.multi_reduction <add>, %21, %cst_5 [0] : vector<4x8x128xf32> to vector<8x128xf32>
    %23 = arith.addf %3, %22 : vector<8x128xf32>
    %cst_6 = arith.constant 1.000000e+00 : f32
    %24 = vector.broadcast %cst_6 : f32 to vector<32x128xf32>
    %25 = arith.subf %24, %10 : vector<32x128xf32>
    %26 = arith.mulf %25, %18 : vector<32x128xf32>
    %27 = vector.shape_cast %26 : vector<32x128xf32> to vector<4x8x128xf32>
    %cst_7 = arith.constant dense<0.000000e+00> : vector<8x128xf32>
    %28 = vector.multi_reduction <add>, %27, %cst_7 [0] : vector<4x8x128xf32> to vector<8x128xf32>
    %29 = arith.addf %3, %28 : vector<8x128xf32>
    %30 = vector.shape_cast %10 : vector<32x128xf32> to vector<4x8x128xf32>
    %cst_8 = arith.constant dense<0.000000e+00> : vector<8x128xf32>
    %31 = vector.multi_reduction <add>, %30, %cst_8 [0] : vector<4x8x128xf32> to vector<8x128xf32>
    %32 = arith.addf %3, %31 : vector<8x128xf32>
    %c1_i32 = arith.constant 1 : i32
    %c0_9 = arith.constant 0 : index
    %c0_10 = arith.constant 0 : index
    %c0_11 = arith.constant 0 : index
    %33 = vector.load %arg3[%c0_9, %c0_10, %c0_11] : memref<3x8x128xf32, #tpu.memory_space<vmem>>, vector<1x8x128xf32>
    %34 = vector.shape_cast %33 : vector<1x8x128xf32> to vector<8x128xf32>
    %35 = arith.addf %34, %23 : vector<8x128xf32>
    %c0_12 = arith.constant 0 : index
    %c0_13 = arith.constant 0 : index
    %c0_14 = arith.constant 0 : index
    %36 = vector.load %arg3[%c0_12, %c0_13, %c0_14] : memref<3x8x128xf32, #tpu.memory_space<vmem>>, vector<1x8x128xf32>
    %37 = vector.shape_cast %36 : vector<1x8x128xf32> to vector<8x128xf32>
    %38 = vector.shape_cast %35 : vector<8x128xf32> to vector<1x8x128xf32>
    tpu.vector_store %arg3[%c0_12, %c0_13, %c0_14], %38 {strides = array<i32>} : memref<3x8x128xf32, #tpu.memory_space<vmem>>, vector<1x8x128xf32>,
    %c1 = arith.constant 1 : index
    %c0_15 = arith.constant 0 : index
    %c0_16 = arith.constant 0 : index
    %39 = vector.load %arg3[%c1, %c0_15, %c0_16] : memref<3x8x128xf32, #tpu.memory_space<vmem>>, vector<1x8x128xf32>
    %40 = vector.shape_cast %39 : vector<1x8x128xf32> to vector<8x128xf32>
    %41 = arith.addf %40, %29 : vector<8x128xf32>
    %c1_17 = arith.constant 1 : index
    %c0_18 = arith.constant 0 : index
    %c0_19 = arith.constant 0 : index
    %42 = vector.load %arg3[%c1_17, %c0_18, %c0_19] : memref<3x8x128xf32, #tpu.memory_space<vmem>>, vector<1x8x128xf32>
    %43 = vector.shape_cast %42 : vector<1x8x128xf32> to vector<8x128xf32>
    %44 = vector.shape_cast %41 : vector<8x128xf32> to vector<1x8x128xf32>
    tpu.vector_store %arg3[%c1_17, %c0_18, %c0_19], %44 {strides = array<i32>} : memref<3x8x128xf32, #tpu.memory_space<vmem>>, vector<1x8x128xf32>,
    %c2 = arith.constant 2 : index
    %c0_20 = arith.constant 0 : index
    %c0_21 = arith.constant 0 : index
    %45 = vector.load %arg3[%c2, %c0_20, %c0_21] : memref<3x8x128xf32, #tpu.memory_space<vmem>>, vector<1x8x128xf32>
    %46 = vector.shape_cast %45 : vector<1x8x128xf32> to vector<8x128xf32>
    %47 = arith.addf %46, %32 : vector<8x128xf32>
    %c2_22 = arith.constant 2 : index
    %c0_23 = arith.constant 0 : index
    %c0_24 = arith.constant 0 : index
    %48 = vector.load %arg3[%c2_22, %c0_23, %c0_24] : memref<3x8x128xf32, #tpu.memory_space<vmem>>, vector<1x8x128xf32>
    %49 = vector.shape_cast %48 : vector<1x8x128xf32> to vector<8x128xf32>
    %50 = vector.shape_cast %47 : vector<8x128xf32> to vector<1x8x128xf32>
    tpu.vector_store %arg3[%c2_22, %c0_23, %c0_24], %50 {strides = array<i32>} : memref<3x8x128xf32, #tpu.memory_space<vmem>>, vector<1x8x128xf32>,
    return
  }
  func.func @transform_0(%arg0: i32) -> (i32, i32) {
    %c0_i32 = arith.constant 0 : i32
    %c0_i32_0 = arith.constant 0 : i32
    return %arg0, %c0_i32 : i32, i32
  }
  func.func @transform_1(%arg0: i32) -> (i32, i32) {
    %c0_i32 = arith.constant 0 : i32
    %c0_i32_0 = arith.constant 0 : i32
    return %arg0, %c0_i32 : i32, i32
  }
  func.func @transform_2(%arg0: i32) -> (i32, i32, i32) {
    %c0_i32 = arith.constant 0 : i32
    %c0_i32_0 = arith.constant 0 : i32
    %c0_i32_1 = arith.constant 0 : i32
    %c0_i32_2 = arith.constant 0 : i32
    return %c0_i32, %c0_i32_0, %c0_i32_1 : i32, i32, i32
  }
}

</mosaic_0001>

<bundles_post_ra>
// kernel: tpu_custom_call.1
= control target key start
LH: loop header
LB: loop body
LE: loop exit
PB: predicated region body
PF: predicated region fallthrough
CT: control target
= control target key end

     0   :  { %7 = vsyncpa [#allocation3], 0  ;;  %s368_s0 = inlined_call_operand.hbm [shape: f32[32,128], index: 0, kind: input, shape index: {}]   ;;  %s369_s1 = inlined_call_operand.hbm [shape: s8[32,128], index: 1, kind: input, shape index: {}]   ;;  %s370_s2 = inlined_call_operand.hbm [shape: f32[3,8,128], index: 2, kind: output, shape index: {}]  }
   0x1   :  { %8 = vsyncpa [#allocation6], 0 }
   0x2   :  { %9 = vsyncpa [#allocation4], 0  ;;  %s14_s11 = sshll.u32 %s368_s0, 4  ;;  %s281_s12 = smov [#allocation2]   ;;  %s15_s11 = int_to_ptr.hbm [resolvable:$true] %s14_s11 }
   0x3   :  { %s16_s13 = sshll.u32 %s281_s12, 4  ;;  %s28_s16 = sshll.u32 %s369_s1, 4  ;;  %s17_s13 = int_to_ptr.vmem [resolvable:$true] %s16_s13  ;;  %s29_s16 = int_to_ptr.hbm [resolvable:$true] %s28_s16 }
   0x4   :  { %s282_s17 = smov 128   ;;  %s283_s18 = smov 8  }
   0x5   :  { %22 = dma.hbm_to_vmem [thread:$0]  %s15_s11, 512, %s17_s13, [#allocation3], %s282_s17, %s282_s17, %s283_s18  }
   0x6   :  { %s284_s19 = smov [#allocation5]  }
   0x7   :  { %s30_s20 = sshll.u32 %s284_s19, 4  ;;  %s31_s20 = int_to_ptr.vmem [resolvable:$true] %s30_s20 }
   0x8   :  { %33 = dma.hbm_to_vmem [thread:$0]  %s29_s16, 128, %s31_s20, [#allocation6]  }
   0x9   :  { %275 = dma.done.wait [#allocation3], 512  }
   0xa   :  { %276 = vsyncadd [#allocation3], 4294966784 }
   0xb   :  { %277 = dma.done.wait [#allocation6], 128  }
   0xc   :  { %278 = vsyncadd [#allocation6], 4294967168  ;;  %v310_v0 = vld [vmem:[#allocation2] sm:$0xff]  ;;  %v312_v1 = vld [vmem:[#allocation2 + $0x8] sm:$0xff]  ;;  %s285_s0 = smov [#allocation7]   ;;  %s167_s23 = sshll.u32 %s370_s2, 4  ;;  %s168_s23 = int_to_ptr.hbm [resolvable:$true] %s167_s23 }
   0xd   :  { %v53_v2 = vld [vmem:[#allocation5] sm:$0xff]  ;;  %v314_v3 = vld [vmem:[#allocation2 + $0x10] sm:$0xff]  ;;  %v316_v4 = vld [vmem:[#allocation2 + $0x18] sm:$0xff]  ;;  %v66_v7 = vand.u32 2147483647, %v310_v0  ;;  %v62_v46 = vmax.f32 %v310_v0, 0.0 }
   0xe   :  { %v54_v5 = vunpack.c.0.s8 %v53_v2  ;;  %v55_v6 = vunpack.c.1.s8 %v53_v2  ;;  %v67_v8 = vand.u32 2147483647, %v312_v1  ;;  %v56_v9 = vunpack.c.2.s8 %v53_v2  ;;  %s165_s1 = sshll.u32 %s285_s0, 4  ;;  %s166_s1 = int_to_ptr.vmem [resolvable:$true] %s165_s1 }
   0xf   :  { %v68_v10 = vand.u32 2147483647, %v314_v3  ;;  %v69_v11 = vand.u32 2147483647, %v316_v4  ;;  %v70_v12 = vsub.f32 0.0, %v66_v7  ;;  %v57_v14 = vunpack.c.3.s8 %v53_v2 }
  0x10   :  { %v71_v13 = vsub.f32 0.0, %v67_v8  ;;  %v322_v15 = vcvt.s32.f32 %v54_v5  ;;  %v324_v16 = vcvt.s32.f32 %v55_v6  ;;  %v326_v21 = vcvt.s32.f32 %v56_v9 }
  0x11   :  { %v72_v17 = vsub.f32 0.0, %v68_v10  ;;  %v73_v18 = vsub.f32 0.0, %v69_v11  ;;  %v74_v19 = vmul.f32 1.442695, %v70_v12  ;;  %v330_v25 = vcvt.s32.f32 %v57_v14 }
  0x12   :  { %v76_v20 = vmul.f32 1.442695, %v71_v13  ;;  %v146_v22 = vadd.f32 %v324_v16, %v322_v15  ;;  %v63_v50 = vmax.f32 %v312_v1, 0.0  ;;  %v64_v55 = vmax.f32 %v314_v3, 0.0 }
  0x13   :  { %187 = vpow2.f32 %v74_v19  ;;  %v78_v23 = vmul.f32 1.442695, %v72_v17  ;;  %v80_v24 = vmul.f32 1.442695, %v73_v18  ;;  %v65_v60 = vmax.f32 %v316_v4, 0.0 }
  0x14   :  { %189 = vpow2.f32 %v76_v20  ;;  %v147_v26 = vadd.f32 %v146_v22, %v326_v21  ;;  %v134_v62 = vsub.f32 1.0, %v322_v15  ;;  %v135_v6 = vsub.f32 1.0, %v324_v16 }
  0x15   :  { %191 = vpow2.f32 %v78_v23  ;;  %v136_v10 = vsub.f32 1.0, %v326_v21  ;;  %v137_v18 = vsub.f32 1.0, %v330_v25 }
  0x16   :  { %193 = vpow2.f32 %v80_v24  ;;  %v148_v27 = vadd.f32 %v147_v26, %v330_v25 }
  0x18   :  { %160 = vst [vmem:[#allocation7 + $0x10] sm:$0xff] %v148_v27 }
  0x19   :  { %v188_v28 = vpop.eup %187 }
  0x1a   :  { %v190_v29 = vpop.eup %189  ;;  %v82_v30 = vadd.f32 1.0, %v188_v28  ;;  %v85_v31 = vmul.f32 -0.5, %v188_v28  ;;  %v88_v39 = vand.u32 2147483647, %v188_v28 }
  0x1b   :  { %v192_v32 = vpop.eup %191  ;;  %v91_v33 = vadd.f32 1.0, %v190_v29  ;;  %v94_v34 = vmul.f32 -0.5, %v190_v29  ;;  %v97_v42 = vand.u32 2147483647, %v190_v29 }
  0x1c   :  { %v194_v35 = vpop.eup %193  ;;  %195 = vlog2.f32 %v82_v30  ;;  %v100_v36 = vadd.f32 1.0, %v192_v32  ;;  %v86_v37 = vadd.f32 1.0, %v85_v31  ;;  %v103_v38 = vmul.f32 -0.5, %v192_v32 }
  0x1d   :  { %197 = vlog2.f32 %v91_v33  ;;  %v95_v40 = vadd.f32 1.0, %v94_v34  ;;  %v109_v41 = vadd.f32 1.0, %v194_v35  ;;  %v112_v44 = vmul.f32 -0.5, %v194_v35 }
  0x1e   :  { %199 = vlog2.f32 %v100_v36  ;;  %v104_v43 = vadd.f32 1.0, %v103_v38  ;;  %v106_v45 = vand.u32 2147483647, %v192_v32  ;;  %v87_v47 = vmul.f32 %v188_v28, %v86_v37 }
  0x1f   :  { %201 = vlog2.f32 %v109_v41  ;;  %v113_v48 = vadd.f32 1.0, %v112_v44  ;;  %vm336_vm0 = vcmp.lt.f32.partialorder %v88_v39, 0.0004427343  ;;  %v96_v52 = vmul.f32 %v190_v29, %v95_v40 }
  0x20   :  { %v115_v53 = vand.u32 2147483647, %v194_v35  ;;  %vm341_vm1 = vcmp.lt.f32.partialorder %v97_v42, 0.0004427343  ;;  %v105_v58 = vmul.f32 %v192_v32, %v104_v43  ;;  %vm107_vm2 = vcmp.lt.f32.partialorder %v106_v45, 0.0004427343 }
  0x21   :  { %v114_v5 = vmul.f32 %v194_v35, %v113_v48 }
  0x22   :  { %v196_v49 = vpop.eup %195  ;;  %vm116_vm3 = vcmp.lt.f32.partialorder %v115_v53, 0.0004427343 }
  0x23   :  { %v198_v54 = vpop.eup %197  ;;  %v84_v56 = vmul.f32 0.6931472, %v196_v49 }
  0x24   :  { %v200_v59 = vpop.eup %199  ;;  %v93_v61 = vmul.f32 0.6931472, %v198_v54 }
  0x25   :  { %v90_v63 = vsel %vm336_vm0, %v87_v47, %v84_v56  ;;  %v102_v2 = vmul.f32 0.6931472, %v200_v59  ;;  %v202_v7 = vpop.eup %201 }
  0x26   :  { %v99_v8 = vsel %vm341_vm1, %v96_v52, %v93_v61  ;;  %v118_v9 = vadd.f32 %v90_v63, %v62_v46  ;;  %v111_v12 = vmul.f32 0.6931472, %v202_v7 }
  0x27   :  { %v108_v11 = vsel %vm107_vm2, %v105_v58, %v102_v2  ;;  %v119_v13 = vadd.f32 %v99_v8, %v63_v50 }
  0x28   :  { %v120_v14 = vadd.f32 %v108_v11, %v64_v55  ;;  %v122_v17 = vsub.f32 %v118_v9, %v310_v0  ;;  %v138_v19 = vmul.f32 %v134_v62, %v118_v9  ;;  %v117_v20 = vsel %vm116_vm3, %v114_v5, %v111_v12 }
  0x29   :  { %v123_v22 = vsub.f32 %v119_v13, %v312_v1  ;;  %v139_v23 = vmul.f32 %v135_v6, %v119_v13  ;;  %v121_v24 = vadd.f32 %v117_v20, %v65_v60 }
  0x2a   :  { %v124_v26 = vsub.f32 %v120_v14, %v314_v3  ;;  %v126_v27 = vmul.f32 %v122_v17, %v322_v15  ;;  %v140_v28 = vmul.f32 %v136_v10, %v120_v14 }
  0x2b   :  { %v127_v29 = vmul.f32 %v123_v22, %v324_v16  ;;  %v142_v30 = vadd.f32 %v139_v23, %v138_v19  ;;  %v125_v31 = vsub.f32 %v121_v24, %v316_v4  ;;  %v141_v32 = vmul.f32 %v137_v18, %v121_v24 }
  0x2c   :  { %v128_v0 = vmul.f32 %v124_v26, %v326_v21 }
  0x2d   :  { %v130_v33 = vadd.f32 %v127_v29, %v126_v27  ;;  %v143_v34 = vadd.f32 %v142_v30, %v140_v28  ;;  %v129_v35 = vmul.f32 %v125_v31, %v330_v25 }
  0x2f   :  { %v131_v1 = vadd.f32 %v130_v33, %v128_v0  ;;  %v144_v36 = vadd.f32 %v143_v34, %v141_v32 }
  0x31   :  { %v132_v3 = vadd.f32 %v131_v1, %v129_v35  ;;  %156 = vst [vmem:[#allocation7 + $0x8] sm:$0xff] %v144_v36 }
  0x33   :  { %152 = vst [vmem:[#allocation7] sm:$0xff] %v132_v3 }
  0x34   :  { %173 = dma.vmem_to_hbm [thread:$0]  %s166_s1, 384, %s168_s23, [#allocation4], %s282_s17, %s282_s17, %s283_s18  }
  0x35   :  { %279 = dma.done.wait [#allocation4], 384  }
  0x36   :  { %280 = vsyncadd [#allocation4], 4294966912 }
  0x37   :  { %178 = vsyncpa [#allocation3], 1 }
  0x38   :  { %179 = vsyncpa [#allocation6], 1 }
  0x39   :  { %180 = vsyncpa [#allocation4], 1 }

</bundles_post_ra>
